<compile_context>
chip_gen: v6e
topology: v6e:2x2x1
jax: 0.10.0
libtpu: 0.0.40
codegen_flags: <defaults>
</compile_context>

<pallas_src>
import jax
import jax.numpy as jnp
from jax.experimental import pallas as pl
from jax.experimental.pallas import tpu as pltpu

_LANES = 128


def _round_up(n, m):
    return ((n + m - 1) // m) * m


def _mlp_kernel(x_ref, w1_ref, b1_ref, w2_ref, b2_ref, w3_ref, b3_ref,
                o_ref, h1_ref, h2_ref):
    # fc1 + ReLU  (bf16 operands, f32 accumulate, f32 epilogue)
    h1 = jnp.dot(x_ref[...], w1_ref[...], preferred_element_type=jnp.float32)
    h1 = jnp.maximum(h1 + b1_ref[...], 0.0)
    h1_ref[...] = h1.astype(h1_ref.dtype)          # bf16 VMEM scratch

    # fc2 + ReLU
    h2 = jnp.dot(h1_ref[...], w2_ref[...], preferred_element_type=jnp.float32)
    h2 = jnp.maximum(h2 + b2_ref[...], 0.0)
    h2_ref[...] = h2.astype(h2_ref.dtype)          # bf16 VMEM scratch

    # fc3 (no activation), lane-dense (padded) output
    out = jnp.dot(h2_ref[...], w3_ref[...], preferred_element_type=jnp.float32)
    o_ref[...] = (out + b3_ref[...]).astype(o_ref.dtype)


def policy_network_forward(x, params, *, tile_b=None,
                           compute_dtype=jnp.bfloat16):
    """x: (B, state_size) float32. params: transposed weights (in,out) + biases (1,out)."""
    w1, b1 = params["w1"], params["b1"]
    w2, b2 = params["w2"], params["b2"]
    w3, b3 = params["w3"], params["b3"]

    B, S = x.shape
    H1 = w1.shape[1]
    H2 = w2.shape[1]
    A = w3.shape[1]

    # --- pad the action dim to a lane-dense multiple of 128 ----------------
    A_pad = _round_up(max(A, _LANES), _LANES)
    if A_pad != A:
        w3 = jnp.zeros((H2, A_pad), w3.dtype).at[:, :A].set(w3)
        b3 = jnp.zeros((1, A_pad), b3.dtype).at[:, :A].set(b3)

    # --- batch tiling -------------------------------------------------------
    if tile_b is None:
        # 256-row tiles fill a 2x256 MXU (v6e/v7x); small batches just get
        # rounded up to the 8-sublane granule.
        tile_b = 256 if B >= 256 else _round_up(B, 8)
    B_pad = _round_up(B, tile_b)
    if B_pad != B:
        x = jnp.zeros((B_pad, S), x.dtype).at[:B, :].set(x)

    # --- dtype: bf16 operands, f32 accumulation & epilogue ------------------
    xc = x.astype(compute_dtype)
    w1c = w1.astype(compute_dtype)
    w2c = w2.astype(compute_dtype)
    w3c = w3.astype(compute_dtype)
    b1f = b1.astype(jnp.float32)
    b2f = b2.astype(jnp.float32)
    b3f = b3.astype(jnp.float32)

    grid = (B_pad // tile_b,)
    const2 = lambda i: (0, 0)   # weights/biases stay resident across batch steps

    out = pl.pallas_call(
        _mlp_kernel,
        out_shape=jax.ShapeDtypeStruct((B_pad, A_pad), jnp.float32),
        grid=grid,
        in_specs=[
            pl.BlockSpec((tile_b, S), lambda i: (i, 0)),   # x: tiled over batch
            pl.BlockSpec((S, H1), const2),                 # w1
            pl.BlockSpec((1, H1), const2),                 # b1
            pl.BlockSpec((H1, H2), const2),                # w2
            pl.BlockSpec((1, H2), const2),                 # b2
            pl.BlockSpec((H2, A_pad), const2),             # w3 (lane-padded)
            pl.BlockSpec((1, A_pad), const2),              # b3 (lane-padded)
        ],
        out_specs=pl.BlockSpec((tile_b, A_pad), lambda i: (i, 0)),
        scratch_shapes=[
            pltpu.VMEM((tile_b, H1), compute_dtype),       # h1
            pltpu.VMEM((tile_b, H2), compute_dtype),       # h2
        ],
        compiler_params=pltpu.CompilerParams(
            dimension_semantics=("parallel",)),
    )(xc, w1c, b1f, w2c, b2f, w3c, b3f)

    # TODO(synk): for serving, keep weights resident across calls
    # (cross-pallas_call prefetch) instead of re-DMAing ~360 KB per invocation.
    return out[:B, :A]


def init_params(key, state_size, action_size):
    """PyTorch nn.Linear-style init (uniform +/- 1/sqrt(fan_in)); weights stored (in, out)."""
    dims = [(state_size, 512), (512, 256), (256, action_size)]
    params = {}
    for i, (fan_in, fan_out) in enumerate(dims, start=1):
        key, kw, kb = jax.random.split(key, 3)
        bound = 1.0 / jnp.sqrt(float(fan_in))
        params[f"w{i}"] = jax.random.uniform(
            kw, (fan_in, fan_out), jnp.float32, -bound, bound)
        params[f"b{i}"] = jax.random.uniform(
            kb, (1, fan_out), jnp.float32, -bound, bound)
    return params


def reference_forward(x, params, compute_dtype=jnp.bfloat16):
    """Same math/precision as the kernel: bf16 operands, f32 accumulate, f32 epilogue."""
    cd = compute_dtype
    h1 = jnp.maximum(
        jnp.dot(x.astype(cd), params["w1"].astype(cd),
                preferred_element_type=jnp.float32) + params["b1"], 0.0)
    h2 = jnp.maximum(
        jnp.dot(h1.astype(cd), params["w2"].astype(cd),
                preferred_element_type=jnp.float32) + params["b2"], 0.0)
    return jnp.dot(h2.astype(cd), params["w3"].astype(cd),
                   preferred_element_type=jnp.float32) + params["b3"]


if __name__ == "__main__":
    key = jax.random.PRNGKey(0)
    key, kx = jax.random.split(key)

    batch = 8
    state_size = 32
    action_size = 8

    x = jax.random.normal(kx, (batch, state_size), jnp.float32)
    params = init_params(key, state_size, action_size)

    out = policy_network_forward(x, params)
    jax.block_until_ready(out)

    ref = reference_forward(x, params)
    assert out.shape == (batch, action_size), out.shape
    assert jnp.allclose(out, ref, atol=2e-2, rtol=2e-2), "mismatch vs reference"

    print("KERNEL_OK")
</pallas_src>

<mosaic_0001>
module attributes {stable_mosaic.version = 11 : i64} {
  func.func @_mlp_kernel(%arg0: i32, %arg1: memref<8x32xbf16, #tpu.memory_space<vmem>>, %arg2: memref<32x512xbf16, #tpu.memory_space<vmem>>, %arg3: memref<1x512xf32, #tpu.memory_space<vmem>>, %arg4: memref<512x256xbf16, #tpu.memory_space<vmem>>, %arg5: memref<1x256xf32, #tpu.memory_space<vmem>>, %arg6: memref<256x128xbf16, #tpu.memory_space<vmem>>, %arg7: memref<1x128xf32, #tpu.memory_space<vmem>>, %arg8: memref<8x128xf32, #tpu.memory_space<vmem>>, %arg9: memref<8x512xbf16, #tpu.memory_space<vmem>>, %arg10: memref<8x256xbf16, #tpu.memory_space<vmem>>) attributes {dimension_semantics = [#tpu.dimension_semantics<parallel>], iteration_bounds = array<i64: 1>, scalar_prefetch = 0 : i64, scratch_operands = 2 : i64, tpu.core_type = #tpu.core_type<tc>, window_params = [{transform_indices = @transform_0, window_bounds = array<i64: 8, 32>}, {pipeline_mode = #tpu.pipeline_mode<synchronous>, transform_indices = @transform_1, window_bounds = array<i64: 32, 512>}, {pipeline_mode = #tpu.pipeline_mode<synchronous>, transform_indices = @transform_2, window_bounds = array<i64: 1, 512>}, {pipeline_mode = #tpu.pipeline_mode<synchronous>, transform_indices = @transform_3, window_bounds = array<i64: 512, 256>}, {pipeline_mode = #tpu.pipeline_mode<synchronous>, transform_indices = @transform_4, window_bounds = array<i64: 1, 256>}, {pipeline_mode = #tpu.pipeline_mode<synchronous>, transform_indices = @transform_5, window_bounds = array<i64: 256, 128>}, {pipeline_mode = #tpu.pipeline_mode<synchronous>, transform_indices = @transform_6, window_bounds = array<i64: 1, 128>}, {transform_indices = @transform_7, window_bounds = array<i64: 8, 128>}]} {
    %c0 = arith.constant 0 : index
    %c0_0 = arith.constant 0 : index
    %0 = vector.load %arg1[%c0, %c0_0] : memref<8x32xbf16, #tpu.memory_space<vmem>>, vector<8x32xbf16>
    %c0_1 = arith.constant 0 : index
    %c0_2 = arith.constant 0 : index
    %1 = vector.load %arg2[%c0_1, %c0_2] : memref<32x512xbf16, #tpu.memory_space<vmem>>, vector<32x512xbf16>
    %cst = arith.constant dense<0.000000e+00> : vector<8x512xf32>
    %2 = tpu.matmul %0, %1, %cst {dimension_numbers = #tpu.dot_dimension_numbers<[1], [0], [0], [1], [0, 0, 1, 1], [], []>} : vector<8x32xbf16>, vector<32x512xbf16>, vector<8x512xf32> -> vector<8x512xf32>
    %c0_3 = arith.constant 0 : index
    %c0_4 = arith.constant 0 : index
    %3 = vector.load %arg3[%c0_3, %c0_4] : memref<1x512xf32, #tpu.memory_space<vmem>>, vector<1x512xf32>
    %4 = vector.broadcast %3 : vector<1x512xf32> to vector<8x512xf32>
    %5 = arith.addf %2, %4 : vector<8x512xf32>
    %cst_5 = arith.constant 0.000000e+00 : f32
    %6 = vector.broadcast %cst_5 : f32 to vector<8x512xf32>
    %7 = arith.maximumf %5, %6 : vector<8x512xf32>
    %8 = arith.truncf %7 : vector<8x512xf32> to vector<8x512xbf16>
    %c0_6 = arith.constant 0 : index
    %c0_7 = arith.constant 0 : index
    %9 = vector.load %arg9[%c0_6, %c0_7] : memref<8x512xbf16, #tpu.memory_space<vmem>>, vector<8x512xbf16>
    tpu.vector_store %arg9[%c0_6, %c0_7], %8 {strides = array<i32>} : memref<8x512xbf16, #tpu.memory_space<vmem>>, vector<8x512xbf16>,
    %c0_8 = arith.constant 0 : index
    %c0_9 = arith.constant 0 : index
    %10 = vector.load %arg9[%c0_8, %c0_9] : memref<8x512xbf16, #tpu.memory_space<vmem>>, vector<8x512xbf16>
    %c0_10 = arith.constant 0 : index
    %c0_11 = arith.constant 0 : index
    %11 = vector.load %arg4[%c0_10, %c0_11] : memref<512x256xbf16, #tpu.memory_space<vmem>>, vector<512x256xbf16>
    %cst_12 = arith.constant dense<0.000000e+00> : vector<8x256xf32>
    %12 = tpu.matmul %10, %11, %cst_12 {dimension_numbers = #tpu.dot_dimension_numbers<[1], [0], [0], [1], [0, 0, 1, 1], [], []>} : vector<8x512xbf16>, vector<512x256xbf16>, vector<8x256xf32> -> vector<8x256xf32>
    %c0_13 = arith.constant 0 : index
    %c0_14 = arith.constant 0 : index
    %13 = vector.load %arg5[%c0_13, %c0_14] : memref<1x256xf32, #tpu.memory_space<vmem>>, vector<1x256xf32>
    %14 = vector.broadcast %13 : vector<1x256xf32> to vector<8x256xf32>
    %15 = arith.addf %12, %14 : vector<8x256xf32>
    %cst_15 = arith.constant 0.000000e+00 : f32
    %16 = vector.broadcast %cst_15 : f32 to vector<8x256xf32>
    %17 = arith.maximumf %15, %16 : vector<8x256xf32>
    %18 = arith.truncf %17 : vector<8x256xf32> to vector<8x256xbf16>
    %c0_16 = arith.constant 0 : index
    %c0_17 = arith.constant 0 : index
    %19 = vector.load %arg10[%c0_16, %c0_17] : memref<8x256xbf16, #tpu.memory_space<vmem>>, vector<8x256xbf16>
    tpu.vector_store %arg10[%c0_16, %c0_17], %18 {strides = array<i32>} : memref<8x256xbf16, #tpu.memory_space<vmem>>, vector<8x256xbf16>,
    %c0_18 = arith.constant 0 : index
    %c0_19 = arith.constant 0 : index
    %20 = vector.load %arg10[%c0_18, %c0_19] : memref<8x256xbf16, #tpu.memory_space<vmem>>, vector<8x256xbf16>
    %c0_20 = arith.constant 0 : index
    %c0_21 = arith.constant 0 : index
    %21 = vector.load %arg6[%c0_20, %c0_21] : memref<256x128xbf16, #tpu.memory_space<vmem>>, vector<256x128xbf16>
    %cst_22 = arith.constant dense<0.000000e+00> : vector<8x128xf32>
    %22 = tpu.matmul %20, %21, %cst_22 {dimension_numbers = #tpu.dot_dimension_numbers<[1], [0], [0], [1], [0, 0, 1, 1], [], []>} : vector<8x256xbf16>, vector<256x128xbf16>, vector<8x128xf32> -> vector<8x128xf32>
    %c0_23 = arith.constant 0 : index
    %c0_24 = arith.constant 0 : index
    %23 = vector.load %arg7[%c0_23, %c0_24] : memref<1x128xf32, #tpu.memory_space<vmem>>, vector<1x128xf32>
    %24 = vector.broadcast %23 : vector<1x128xf32> to vector<8x128xf32>
    %25 = arith.addf %22, %24 : vector<8x128xf32>
    %c0_25 = arith.constant 0 : index
    %c0_26 = arith.constant 0 : index
    %26 = vector.load %arg8[%c0_25, %c0_26] : memref<8x128xf32, #tpu.memory_space<vmem>>, vector<8x128xf32>
    tpu.vector_store %arg8[%c0_25, %c0_26], %25 {strides = array<i32>} : memref<8x128xf32, #tpu.memory_space<vmem>>, vector<8x128xf32>,
    return
  }
  func.func @transform_0(%arg0: i32) -> (i32, i32) {
    %c0_i32 = arith.constant 0 : i32
    %c0_i32_0 = arith.constant 0 : i32
    return %arg0, %c0_i32 : i32, i32
  }
  func.func @transform_1(%arg0: i32) -> (i32, i32) {
    %c0_i32 = arith.constant 0 : i32
    %c0_i32_0 = arith.constant 0 : i32
    %c0_i32_1 = arith.constant 0 : i32
    return %c0_i32, %c0_i32_0 : i32, i32
  }
  func.func @transform_2(%arg0: i32) -> (i32, i32) {
    %c0_i32 = arith.constant 0 : i32
    %c0_i32_0 = arith.constant 0 : i32
    %c0_i32_1 = arith.constant 0 : i32
    return %c0_i32, %c0_i32_0 : i32, i32
  }
  func.func @transform_3(%arg0: i32) -> (i32, i32) {
    %c0_i32 = arith.constant 0 : i32
    %c0_i32_0 = arith.constant 0 : i32
    %c0_i32_1 = arith.constant 0 : i32
    return %c0_i32, %c0_i32_0 : i32, i32
  }
  func.func @transform_4(%arg0: i32) -> (i32, i32) {
    %c0_i32 = arith.constant 0 : i32
    %c0_i32_0 = arith.constant 0 : i32
    %c0_i32_1 = arith.constant 0 : i32
    return %c0_i32, %c0_i32_0 : i32, i32
  }
  func.func @transform_5(%arg0: i32) -> (i32, i32) {
    %c0_i32 = arith.constant 0 : i32
    %c0_i32_0 = arith.constant 0 : i32
    %c0_i32_1 = arith.constant 0 : i32
    return %c0_i32, %c0_i32_0 : i32, i32
  }
  func.func @transform_6(%arg0: i32) -> (i32, i32) {
    %c0_i32 = arith.constant 0 : i32
    %c0_i32_0 = arith.constant 0 : i32
    %c0_i32_1 = arith.constant 0 : i32
    return %c0_i32, %c0_i32_0 : i32, i32
  }
  func.func @transform_7(%arg0: i32) -> (i32, i32) {
    %c0_i32 = arith.constant 0 : i32
    %c0_i32_0 = arith.constant 0 : i32
    return %arg0, %c0_i32 : i32, i32
  }
}

</mosaic_0001>

<bundles_post_ra>
// kernel: tpu_custom_call.1
= control target key start
LH: loop header
LB: loop body
LE: loop exit
PB: predicated region body
PF: predicated region fallthrough
CT: control target
= control target key end

     0   :  { %12 = vsyncpa [#allocation5], 0  ;;  %s1466_s0 = inlined_call_operand.hbm [shape: bf16[8,32], index: 0, kind: input, shape index: {}]   ;;  %s1467_s1 = inlined_call_operand.hbm [shape: bf16[32,512], index: 1, kind: input, shape index: {}]   ;;  %s1468_s2 = inlined_call_operand.hbm [shape: f32[1,512], index: 2, kind: input, shape index: {}]   ;;  %s1469_s3 = inlined_call_operand.hbm [shape: bf16[512,256], index: 3, kind: input, shape index: {}]   ;;  %s1470_s4 = inlined_call_operand.vmem [shape: f32[1,256], index: 4, kind: input, shape index: {}]   ;;  %s1471_s5 = inlined_call_operand.hbm [shape: bf16[256,128], index: 5, kind: input, shape index: {}]   ;;  %s1472_s6 = inlined_call_operand.vmem [shape: f32[1,128], index: 6, kind: input, shape index: {}]   ;;  %s1473_s7 = inlined_call_operand.hbm [shape: f32[8,128], index: 7, kind: output, shape index: {}]  }
   0x1   :  { %13 = vsyncpa [#allocation8], 0 }
   0x2   :  { %14 = vsyncpa [#allocation11], 0 }
   0x3   :  { %15 = vsyncpa [#allocation6], 0  ;;  %s1373_s24 = smov [#allocation7]  }
   0x4   :  { %s31_s25 = sshll.u32 %s1373_s24, 4  ;;  %s32_s25 = int_to_ptr.vmem [resolvable:$true] %s31_s25 }
   0x5   :  { %s1253_s26 = scalar_lea.vmem %s32_s25, 1024  ;;  %p1258_p1 = scmp.lt.s32.totalorder %s32_s25, %s32_s25 }
   0x6   :  { %p1254_p0 = scmp.ne.s32.totalorder %s32_s25, %s1253_s26  ;;  %p1259_p2 = scmp.lt.s32.totalorder %s1253_s26, %s1253_s26 }
   0x8   :  { %p1260_p3 = por %p1259_p2, %p1258_p1 }
   0xa   :  { %p1261_p4 = pnand %p1260_p3, %p1254_p0 }
   0xc   :  { %1264 = shalt.err (!%p1261_p4)
}
   0xd   :  { %s1374_s27 = smov 256   ;;  %s1375_s28 = smov 16  }
   0xe   :  { %37 = dma.hbm_to_vmem [thread:$0]  %s1467_s1, 1024, %s32_s25, [#allocation8], %s1374_s27, %s1374_s27, %s1375_s28  }
   0xf   :  { %s1376_s8 = smov [#allocation10]  }
  0x10   :  { %s53_s9 = sshll.u32 %s1376_s8, 4  ;;  %s54_s9 = int_to_ptr.vmem [resolvable:$true] %s53_s9 }
  0x11   :  { %s1273_s10 = scalar_lea.vmem %s54_s9, 8192  ;;  %p1278_p6 = scmp.lt.s32.totalorder %s54_s9, %s54_s9 }
  0x12   :  { %p1274_p5 = scmp.ne.s32.totalorder %s54_s9, %s1273_s10  ;;  %p1279_p7 = scmp.lt.s32.totalorder %s1273_s10, %s1273_s10 }
  0x14   :  { %p1280_p8 = por %p1279_p7, %p1278_p6 }
  0x16   :  { %p1281_p9 = pnand %p1280_p8, %p1274_p5 }
  0x18   :  { %1284 = shalt.err (!%p1281_p9)
}
  0x19   :  { %s1377_s11 = smov 128   ;;  %s1378_s12 = smov 8  }
  0x1a   :  { %59 = dma.hbm_to_vmem [thread:$0]  %s1469_s3, 8192, %s54_s9, [#allocation11], %s1377_s11, %s1377_s11, %s1378_s12  }
  0x1b   :  { %s1379_s15 = smov [#allocation4]   ;;  %s1380_s17 = smov [#allocation9]  }
  0x1c   :  { %s22_s16 = sshll.u32 %s1379_s15, 4  ;;  %s44_s1 = sshll.u32 %s1380_s17, 4  ;;  %s23_s16 = int_to_ptr.vmem [resolvable:$true] %s22_s16  ;;  %s45_s1 = int_to_ptr.vmem [resolvable:$true] %s44_s1 }
  0x1d   :  { %s1293_s18 = scalar_lea.vmem %s23_s16, 64  ;;  %p1298_p11 = scmp.lt.s32.totalorder %s23_s16, %s23_s16 }
  0x1e   :  { %p1294_p10 = scmp.ne.s32.totalorder %s23_s16, %s1293_s18  ;;  %p1299_p12 = scmp.lt.s32.totalorder %s1293_s18, %s1293_s18 }
  0x20   :  { %p1300_p13 = por %p1299_p12, %p1298_p11 }
  0x22   :  { %p1301_p0 = pnand %p1300_p13, %p1294_p10 }
  0x24   :  { %1304 = shalt.err (!%p1301_p0)
}
  0x25   :  { %25 = dma.hbm_to_vmem [thread:$0]  %s1466_s0, 64, %s23_s16, [#allocation5]  }
  0x26   :  { %s1313_s21 = scalar_lea.vmem %s45_s1, 64  ;;  %p1318_p2 = scmp.lt.s32.totalorder %s45_s1, %s45_s1 }
  0x27   :  { %p1314_p1 = scmp.ne.s32.totalorder %s45_s1, %s1313_s21  ;;  %p1319_p3 = scmp.lt.s32.totalorder %s1313_s21, %s1313_s21 }
  0x29   :  { %p1320_p4 = por %p1319_p3, %p1318_p2 }
  0x2b   :  { %p1321_p5 = pnand %p1320_p4, %p1314_p1 }
  0x2d   :  { %1324 = shalt.err (!%p1321_p5)
}
  0x2e   :  { %47 = dma.hbm_to_vmem [thread:$0]  %s1468_s2, 64, %s45_s1, [#allocation8]  }
  0x2f   :  { %s1381_s23 = smov [#allocation12]  }
  0x30   :  { %s67_s24 = sshll.u32 %s1381_s23, 4  ;;  %s68_s24 = int_to_ptr.vmem [resolvable:$true] %s67_s24 }
  0x31   :  { %s1333_s25 = scalar_lea.vmem %s68_s24, 2048  ;;  %p1338_p7 = scmp.lt.s32.totalorder %s68_s24, %s68_s24 }
  0x32   :  { %p1334_p6 = scmp.ne.s32.totalorder %s68_s24, %s1333_s25  ;;  %p1339_p8 = scmp.lt.s32.totalorder %s1333_s25, %s1333_s25 }
  0x34   :  { %p1340_p9 = por %p1339_p8, %p1338_p7 }
  0x36   :  { %p1341_p10 = pnand %p1340_p9, %p1334_p6 }
  0x38   :  { %1344 = shalt.err (!%p1341_p10)
}
  0x39   :  { %s1382_s0 = smov 64   ;;  %s1383_s26 = smov 4  }
  0x3a   :  { %73 = dma.hbm_to_vmem [thread:$0]  %s1471_s5, 2048, %s68_s24, [#allocation11], %s1382_s0, %s1382_s0, %s1383_s26  }
  0x3b   :  { %1365 = dma.done.wait [#allocation5], 64  }
  0x3c   :  { %1366 = vsyncadd [#allocation5], 4294967232 }
  0x3d   :  { %1367 = dma.done.wait [#allocation8], 1088  }
  0x3e   :  { %1368 = vsyncadd [#allocation8], 4294966208 }
  0x3f   :  { %1369 = dma.done.wait [#allocation11], 10240  }
  0x40   :  { %1370 = vsyncadd [#allocation11], 4294957056  ;;  %v1384_v0 = vmov 0   ;;  %v1121_v1 = vld [vmem:[#allocation7 + $0x24] ss:$16 sps:$4 sm:$0xff]   ;;  %vm163_vm0 = vcmask 261120  }
  0x41   :  { %199 = vmatprep.mubr.bf16.mxu1 %v1384_v0  ;;  %v1123_v2 = vld [vmem:[#allocation7 + $0x20] ss:$16 sps:$4 sm:$0xff]   ;;  %179 = vmatprep.subr.bf16.mxu1 %v1121_v1  ;;  %v1124_v3 = vld [vmem:[#allocation7 + $0x4] ss:$16 sps:$4 sm:$0xff]   ;;  %v1129_v5 = vld [vmem:[#allocation7 + $0x2c] ss:$16 sps:$4 sm:$0xff]  }
  0x42   :  { %180 = vmatpush1.bf16.msra.mxu1 %v1123_v2  ;;  %v1126_v4 = vld [vmem:[#allocation7] ss:$16 sps:$4 sm:$0xff]   ;;  %v92_v6 = vld [vmem:[#allocation4] sm:$0xf]  ;;  %v1127_v7 = vld [vmem:[#allocation7 + $0x28] ss:$16 sps:$4 sm:$0xff]  }
  0x43   :  { %181 = vmatprep.subr.bf16.mxu1 %v1124_v3  ;;  %v1133_v8 = vld [vmem:[#allocation10 + $0x74] ss:$8 sps:$4 sm:$0xff]   ;;  %v1135_v9 = vld [vmem:[#allocation10 + $0x70] ss:$8 sps:$4 sm:$0xff]   ;;  %v1136_v10 = vld [vmem:[#allocation10 + $0x64] ss:$8 sps:$4 sm:$0xff]  }
  0x44   :  { %v1132_v11 = vld [vmem:[#allocation7 + $0xc] ss:$16 sps:$4 sm:$0xff]   ;;  %683 = vmatprep.subr.bf16.mxu0 %v1133_v8  ;;  %v1139_v13 = vld [vmem:[#allocation10 + $0x54] ss:$8 sps:$4 sm:$0xff]   ;;  %v1145_v17 = vld [vmem:[#allocation10 + $0x44] ss:$8 sps:$4 sm:$0xff]  }
  0x45   :  { %684 = vmatpush1.bf16.msra.mxu0 %v1135_v9  ;;  %v1138_v12 = vld [vmem:[#allocation10 + $0x60] ss:$8 sps:$4 sm:$0xff]   ;;  %v1130_v14 = vld [vmem:[#allocation7 + $0x8] ss:$16 sps:$4 sm:$0xff]   ;;  %v1144_v16 = vld [vmem:[#allocation10 + $0x50] ss:$8 sps:$4 sm:$0xff]  }
  0x46   :  { %182 = vmatpush1.bf16.msra.mxu1 %v1126_v4  ;;  %685 = vmatprep.subr.bf16.mxu0 %v1136_v10  ;;  %v1143_v15 = vld [vmem:[#allocation10 + $0x174] ss:$8 sps:$4 sm:$0xff]   ;;  %v1141_v18 = vld [vmem:[#allocation10 + $0x170] ss:$8 sps:$4 sm:$0xff]   ;;  %v1149_v19 = vld [vmem:[#allocation10 + $0x164] ss:$8 sps:$4 sm:$0xff]  }
  0x47   :  { %220 = vmatprep.subr.bf16.mxu1 %v1129_v5  ;;  %v1150_v20 = vld [vmem:[#allocation10 + $0x40] ss:$8 sps:$4 sm:$0xff]   ;;  %v1151_v21 = vld [vmem:[#allocation10 + $0x34] ss:$8 sps:$4 sm:$0xff]   ;;  %v1156_v24 = vld [vmem:[#allocation10 + $0x30] ss:$8 sps:$4 sm:$0xff]  }
  0x48   :  { %v1147_v22 = vld [vmem:[#allocation10 + $0x160] ss:$8 sps:$4 sm:$0xff]   ;;  %v1155_v23 = vld [vmem:[#allocation10 + $0x154] ss:$8 sps:$4 sm:$0xff]   ;;  %v1157_v25 = vld [vmem:[#allocation10 + $0x24] ss:$8 sps:$4 sm:$0xff]  }
  0x49   :  { %985 = vmatmul.mubr.msk.bf16.vlgmr.msra.gmra.mxu1 %vm163_vm0, %v92_v6  ;;  %686 = vmatpush1.bf16.msra.mxu0 %v1138_v12  ;;  %v1153_v26 = vld [vmem:[#allocation10 + $0x150] ss:$8 sps:$4 sm:$0xff]   ;;  %v1161_v27 = vld [vmem:[#allocation10 + $0x144] ss:$8 sps:$4 sm:$0xff]   ;;  %v1162_v28 = vld [vmem:[#allocation10 + $0x20] ss:$8 sps:$4 sm:$0xff]  }
  0x4a   :  { %221 = vmatpush1.bf16.msra.mxu1 %v1127_v7  ;;  %240 = vmatprep.mubr.bf16.mxu1 %v1384_v0  ;;  %v1163_v29 = vld [vmem:[#allocation10 + $0x14] ss:$8 sps:$4 sm:$0xff]   ;;  %v1159_v30 = vld [vmem:[#allocation10 + $0x140] ss:$8 sps:$4 sm:$0xff]   ;;  %v1168_v32 = vld [vmem:[#allocation10 + $0x10] ss:$8 sps:$4 sm:$0xff]  }
  0x4b   :  { %222 = vmatprep.subr.bf16.mxu1 %v1132_v11  ;;  %687 = vmatprep.subr.bf16.mxu0 %v1139_v13  ;;  %v1167_v31 = vld [vmem:[#allocation10 + $0x134] ss:$8 sps:$4 sm:$0xff]   ;;  %v1169_v33 = vld [vmem:[#allocation10 + $0x4] ss:$8 sps:$4 sm:$0xff]   ;;  %v1165_v34 = vld [vmem:[#allocation10 + $0x130] ss:$8 sps:$4 sm:$0xff]   ;;  %v103_v11 = vlaneseq }
  0x4c   :  { %v1173_v35 = vld [vmem:[#allocation10 + $0x124] ss:$8 sps:$4 sm:$0xff]   ;;  %v1174_v36 = vld [vmem:[#allocation10] ss:$8 sps:$4 sm:$0xff]   ;;  %v1175_v37 = vld [vmem:[#allocation10 + $0xf4] ss:$8 sps:$4 sm:$0xff]  }
  0x4d   :  { %688 = vmatpush1.bf16.msra.mxu0 %v1144_v16  ;;  %v1171_v38 = vld [vmem:[#allocation10 + $0x120] ss:$8 sps:$4 sm:$0xff]   ;;  %v1179_v39 = vld [vmem:[#allocation10 + $0x114] ss:$8 sps:$4 sm:$0xff]   ;;  %v1180_v40 = vld [vmem:[#allocation10 + $0xf0] ss:$8 sps:$4 sm:$0xff]  }
  0x4e   :  { %223 = vmatpush1.bf16.msra.mxu1 %v1130_v14  ;;  %689 = vmatprep.subr.bf16.mxu0 %v1145_v17  ;;  %v1181_v41 = vld [vmem:[#allocation10 + $0xe4] ss:$8 sps:$4 sm:$0xff]   ;;  %v1177_v42 = vld [vmem:[#allocation10 + $0x110] ss:$8 sps:$4 sm:$0xff]   ;;  %v1186_v44 = vld [vmem:[#allocation10 + $0xe0] ss:$8 sps:$4 sm:$0xff]  }
  0x4f   :  { %724 = vmatprep.subr.bf16.mxu1 %v1143_v15  ;;  %v1185_v43 = vld [vmem:[#allocation10 + $0x104] ss:$8 sps:$4 sm:$0xff]   ;;  %v1187_v45 = vld [vmem:[#allocation10 + $0xd4] ss:$8 sps:$4 sm:$0xff]   ;;  %v1183_v46 = vld [vmem:[#allocation10 + $0x100] ss:$8 sps:$4 sm:$0xff]  }
  0x50   :  { %v1191_v47 = vld [vmem:[#allocation10 + $0x1f4] ss:$8 sps:$4 sm:$0xff]   ;;  %v1192_v48 = vld [vmem:[#allocation10 + $0xd0] ss:$8 sps:$4 sm:$0xff]   ;;  %v1193_v49 = vld [vmem:[#allocation10 + $0xc4] ss:$8 sps:$4 sm:$0xff]  }
  0x51   :  { %986 = vmatmul.mubr.msk.bf16.vlgmr.msra.gmra.mxu1 %vm163_vm0, %v92_v6  ;;  %690 = vmatpush1.bf16.msra.mxu0 %v1150_v20  ;;  %v1189_v50 = vld [vmem:[#allocation10 + $0x1f0] ss:$8 sps:$4 sm:$0xff]   ;;  %v1197_v51 = vld [vmem:[#allocation10 + $0x1e4] ss:$8 sps:$4 sm:$0xff]   ;;  %v1198_v52 = vld [vmem:[#allocation10 + $0xc0] ss:$8 sps:$4 sm:$0xff]  }
  0x52   :  { %725 = vmatpush1.bf16.msra.mxu1 %v1141_v18  ;;  %691 = vmatprep.subr.bf16.mxu0 %v1151_v21  ;;  %v1199_v53 = vld [vmem:[#allocation10 + $0xb4] ss:$8 sps:$4 sm:$0xff]   ;;  %v1195_v54 = vld [vmem:[#allocation10 + $0x1e0] ss:$8 sps:$4 sm:$0xff]   ;;  %v1204_v56 = vld [vmem:[#allocation10 + $0xb0] ss:$8 sps:$4 sm:$0xff]  }
  0x53   :  { %726 = vmatprep.subr.bf16.mxu1 %v1149_v19  ;;  %v1203_v55 = vld [vmem:[#allocation10 + $0x1d4] ss:$8 sps:$4 sm:$0xff]   ;;  %v1205_v57 = vld [vmem:[#allocation10 + $0xa4] ss:$8 sps:$4 sm:$0xff]   ;;  %v1201_v58 = vld [vmem:[#allocation10 + $0x1d0] ss:$8 sps:$4 sm:$0xff]  }
  0x54   :  { %v1209_v59 = vld [vmem:[#allocation10 + $0x1c4] ss:$8 sps:$4 sm:$0xff]   ;;  %v1210_v60 = vld [vmem:[#allocation10 + $0xa0] ss:$8 sps:$4 sm:$0xff]   ;;  %v1211_v62 = vld [vmem:[#allocation10 + $0x94] ss:$8 sps:$4 sm:$0xff]  }
  0x55   :  { %692 = vmatpush1.bf16.msra.mxu0 %v1156_v24  ;;  %v1207_v61 = vld [vmem:[#allocation10 + $0x1c0] ss:$8 sps:$4 sm:$0xff]   ;;  %v1215_v63 = vld [vmem:[#allocation10 + $0x1b4] ss:$8 sps:$4 sm:$0xff]   ;;  %v1213_v0 = vld [vmem:[#allocation10 + $0x1b0] ss:$8 sps:$4 sm:$0xff]  }
  0x56   :  { %727 = vmatpush1.bf16.msra.mxu1 %v1147_v22  ;;  %693 = vmatprep.subr.bf16.mxu0 %v1157_v25  ;;  %v1216_v1 = vld [vmem:[#allocation10 + $0x90] ss:$8 sps:$4 sm:$0xff]   ;;  %v1217_v2 = vld [vmem:[#allocation10 + $0x84] ss:$8 sps:$4 sm:$0xff]   ;;  %v1219_v4 = vld [vmem:[#allocation10 + $0x1a0] ss:$8 sps:$4 sm:$0xff]  }
  0x57   :  { %728 = vmatprep.subr.bf16.mxu1 %v1155_v23  ;;  %v1221_v3 = vld [vmem:[#allocation10 + $0x1a4] ss:$8 sps:$4 sm:$0xff]   ;;  %v1222_v5 = vld [vmem:[#allocation10 + $0x80] ss:$8 sps:$4 sm:$0xff]   ;;  %v1225_v6 = vld [vmem:[#allocation10 + $0x194] ss:$8 sps:$4 sm:$0xff]  }
  0x58   :  { %v1223_v7 = vld [vmem:[#allocation10 + $0x190] ss:$8 sps:$4 sm:$0xff]   ;;  %v1228_v8 = vld [vmem:[#allocation10 + $0x184] ss:$8 sps:$4 sm:$0xff]   ;;  %v1226_v9 = vld [vmem:[#allocation10 + $0x180] ss:$8 sps:$4 sm:$0xff]  }
  0x59   :  { %694 = vmatpush1.bf16.msra.mxu0 %v1162_v28  ;;  %v1229_v10 = vld [vmem:[#allocation12 + $0x78] sm:$0xff]   ;;  %v1443_v12 = vshrl.u32 %v103_v11, 7  ;;  %s1385_s30 = smov [#allocation13]  }
  0x5a   :  { %729 = vmatpush1.bf16.msra.mxu1 %v1153_v26  ;;  %695 = vmatprep.subr.bf16.mxu0 %v1163_v29  ;;  %v101_v14 = vld [vmem:[#allocation9] sm:$0xf]  ;;  %s966_s8 = sshll.u32 %s1385_s30, 4  ;;  %s967_s8 = int_to_ptr.vmem [resolvable:$true] %s966_s8 }
  0x5b   :  { %730 = vmatprep.subr.bf16.mxu1 %v1161_v27  ;;  %v105_v13 = vsub.s32 0, %v1443_v12  ;;  %v109_v15 = vsub.s32 1, %v1443_v12  ;;  %v113_v20 = vsub.s32 2, %v1443_v12  ;;  %v117_v23 = vsub.s32 3, %v1443_v12  ;;  %v1058_v12 = vld [vmem:[%s1472_s6] ss:$0 sm:$0xff]  ;;  %p1350_p12 = scmp.lt.s32.totalorder %s967_s8, %s967_s8 }
  0x5c   :  { %s1345_s9 = scalar_lea.vmem %s967_s8, 128 }
  0x5d   :  { %696 = vmatpush1.bf16.msra.mxu0 %v1168_v32  ;;  %v106_v16 = vrot.slane %v101_v14, %v105_v13  ;;  %v110_v17 = vrot.slane %v101_v14, %v109_v15  ;;  %v114_v26 = vrot.slane %v101_v14, %v113_v20  ;;  %p1346_p11 = scmp.ne.s32.totalorder %s967_s8, %s1345_s9  ;;  %p1351_p13 = scmp.lt.s32.totalorder %s1345_s9, %s1345_s9 }
  0x5e   :  { %731 = vmatpush1.bf16.msra.mxu1 %v1159_v30  ;;  %697 = vmatprep.subr.bf16.mxu0 %v1169_v33  ;;  %v118_v30 = vrot.slane %v101_v14, %v117_v23 }
  0x5f   :  { %732 = vmatprep.subr.bf16.mxu1 %v1167_v31  ;;  %v1230_v31 = vld [vmem:[#allocation12 + $0x38] sm:$0xff]   ;;  %p1352_p0 = por %p1351_p13, %p1350_p12 }
  0x61   :  { %698 = vmatpush1.bf16.msra.mxu0 %v1174_v36  ;;  %p1353_p1 = pnand %p1352_p0, %p1346_p11 }
  0x62   :  { %733 = vmatpush1.bf16.msra.mxu1 %v1165_v34  ;;  %699 = vmatprep.subr.bf16.mxu0 %v1175_v37  ;;  %v1231_v34 = vld [vmem:[#allocation12 + $0x70] sm:$0xff]  }
  0x63   :  { %734 = vmatprep.subr.bf16.mxu1 %v1173_v35 }
  0x65   :  { %700 = vmatpush2.bf16.msra.mxu0 %v1180_v40 }
  0x66   :  { %735 = vmatpush1.bf16.msra.mxu1 %v1171_v38  ;;  %701 = vmatprep.subr.bf16.mxu0 %v1181_v41  ;;  %v1232_v38 = vld [vmem:[#allocation12 + $0x30] sm:$0xff]   ;;  %v1233_v41 = vld [vmem:[#allocation12 + $0x68] sm:$0xff]  }
  0x67   :  { %736 = vmatprep.subr.bf16.mxu1 %v1179_v39 }
  0x69   :  { %702 = vmatpush2.bf16.msra.mxu0 %v1186_v44 }
  0x6a   :  { %737 = vmatpush1.bf16.msra.mxu1 %v1177_v42  ;;  %703 = vmatprep.subr.bf16.mxu0 %v1187_v45  ;;  %v1234_v45 = vld [vmem:[#allocation12 + $0x28] sm:$0xff]  }
  0x6b   :  { %738 = vmatprep.subr.bf16.mxu1 %v1185_v43 }
  0x6d   :  { %704 = vmatpush2.bf16.msra.mxu0 %v1192_v48  ;;  %v1236_v48 = vld [vmem:[#allocation12 + $0x20] sm:$0xff]  }
  0x6e   :  { %739 = vmatpush1.bf16.msra.mxu1 %v1183_v46  ;;  %705 = vmatprep.subr.bf16.mxu0 %v1193_v49  ;;  %v1237_v49 = vld [vmem:[#allocation12 + $0x58] sm:$0xff]  }
  0x6f   :  { %740 = vmatprep.subr.bf16.mxu1 %v1191_v47  ;;  %v1235_v47 = vld [vmem:[#allocation12 + $0x60] sm:$0xff]  }
  0x71   :  { %706 = vmatpush2.bf16.msra.mxu0 %v1198_v52  ;;  %v1240_v52 = vld [vmem:[#allocation12 + $0x10] sm:$0xff]  }
  0x72   :  { %741 = vmatpush2.bf16.msra.mxu1 %v1189_v50  ;;  %707 = vmatprep.subr.bf16.mxu0 %v1199_v53  ;;  %v1238_v50 = vld [vmem:[#allocation12 + $0x18] sm:$0xff]   ;;  %v1241_v53 = vld [vmem:[#allocation12 + $0x48] sm:$0xff]  }
  0x73   :  { %742 = vmatprep.subr.bf16.mxu1 %v1197_v51  ;;  %v1239_v51 = vld [vmem:[#allocation12 + $0x50] sm:$0xff]  }
  0x75   :  { %708 = vmatpush2.bf16.msra.mxu0 %v1204_v56  ;;  %v1244_v56 = vld [vmem:[#allocation12] sm:$0xff]  }
  0x76   :  { %743 = vmatpush2.bf16.msra.mxu1 %v1195_v54  ;;  %709 = vmatprep.subr.bf16.mxu0 %v1205_v57  ;;  %v1242_v54 = vld [vmem:[#allocation12 + $0x8] sm:$0xff]   ;;  %v337_v57 = vld [vmem:[%s1470_s4] sm:$0x3] }
  0x77   :  { %744 = vmatprep.subr.bf16.mxu1 %v1203_v55  ;;  %v1243_v55 = vld [vmem:[#allocation12 + $0x40] sm:$0xff]  }
  0x79   :  { %710 = vmatpush2.bf16.msra.mxu0 %v1210_v60  ;;  %v342_v60 = vrot.slane %v337_v57, %v105_v13 }
  0x7a   :  { %745 = vmatpush2.bf16.msra.mxu1 %v1201_v58  ;;  %711 = vmatprep.subr.bf16.mxu0 %v1211_v62  ;;  %v346_v62 = vrot.slane %v337_v57, %v109_v15 }
  0x7b   :  { %746 = vmatprep.subr.bf16.mxu1 %v1209_v59 }
  0x7d   :  { %712 = vmatpush2.bf16.msra.mxu0 %v1216_v1 }
  0x7e   :  { %747 = vmatpush2.bf16.msra.mxu1 %v1207_v61  ;;  %713 = vmatprep.subr.bf16.mxu0 %v1217_v2 }
  0x7f   :  { %748 = vmatprep.subr.bf16.mxu1 %v1215_v63 }
  0x81   :  { %714 = vmatpush2.bf16.msra.mxu0 %v1222_v5 }
  0x82   :  { %749 = vmatpush2.bf16.msra.mxu1 %v1213_v0  ;;  %1086 = vmatprep.subr.bf16.mxu0 %v1229_v10 }
  0x83   :  { %750 = vmatprep.subr.bf16.mxu1 %v1221_v3 }
  0x86   :  { %751 = vmatpush2.bf16.msra.mxu1 %v1219_v4 }
  0x87   :  { %752 = vmatprep.subr.bf16.mxu1 %v1225_v6 }
  0x8a   :  { %753 = vmatpush2.bf16.msra.mxu1 %v1223_v7 }
  0x8b   :  { %754 = vmatprep.subr.bf16.mxu1 %v1228_v8 }
  0x8e   :  { %755 = vmatpush2.bf16.msra.mxu1 %v1226_v9 }
 0x109   :  { %v201_v18 = vpop.f32.mrf.mxu1 }
 0x10a   :  { %v202_v19 = vadd.f32 %v201_v18, %v106_v16 }
 0x10b   :  { %v203_v21 = vpop.f32.mrf.mxu1 }
 0x10c   :  { %v204_v22 = vadd.f32 %v203_v21, %v110_v17  ;;  %v249_v24 = vmax.f32 %v202_v19, 0.0 }
 0x10d   :  { %v205_v25 = vpop.f32.mrf.mxu1 }
 0x10e   :  { %v250_v27 = vmax.f32 %v204_v22, 0.0  ;;  %v1080_v32 = vpack.c.bf16 %v249_v24, %v249_v24 }
 0x10f   :  { %v206_v28 = vpop.f32.mrf.mxu1 }
 0x110   :  { %v1081_v29 = vpack.c.bf16 %v250_v27, %v250_v27 }
 0x111   :  { %v242_v33 = vpop.f32.mrf.mxu1 }
 0x112   :  { %v243_v35 = vadd.f32 %v242_v33, %v114_v26  ;;  %715 = vmatprep.mubr.bf16.mxu0 %v1081_v29 }
 0x113   :  { %v244_v36 = vpop.f32.mrf.mxu1  ;;  %716 = vmatmul.mubr.bf16.vlgmr.msra.gmra.mxu0 %v1080_v32 }
 0x114   :  { %v245_v37 = vadd.f32 %v244_v36, %v118_v30  ;;  %1087 = vmatpush3.bf16.msra.mxu0 %v1230_v31  ;;  %v251_v39 = vmax.f32 %v243_v35, 0.0 }
 0x115   :  { %v246_v40 = vpop.f32.mrf.mxu1  ;;  %1088 = vmatprep.subr.bf16.mxu0 %v1231_v34 }
 0x116   :  { %v252_v42 = vmax.f32 %v245_v37, 0.0  ;;  %v1082_v46 = vpack.c.bf16 %v251_v39, %v251_v39 }
 0x117   :  { %v247_v43 = vpop.f32.mrf.mxu1 }
 0x118   :  { %v1083_v44 = vpack.c.bf16 %v252_v42, %v252_v42  ;;  %1089 = vmatpush3.bf16.msra.mxu0 %v1232_v38 }
 0x119   :  { %1090 = vmatprep.subr.bf16.mxu0 %v1233_v41 }
 0x11a   :  { %756 = vmatprep.mubr.bf16.mxu1 %v1083_v44 }
 0x11b   :  { %757 = vmatmul.mubr.bf16.vlgmr.msra.gmra.mxu1 %v1082_v46 }
 0x11c   :  { %1091 = vmatpush3.bf16.msra.mxu0 %v1234_v45 }
 0x11d   :  { %1092 = vmatprep.subr.bf16.mxu0 %v1235_v47 }
 0x120   :  { %1093 = vmatpush3.bf16.msra.mxu0 %v1236_v48 }
 0x121   :  { %1094 = vmatprep.subr.bf16.mxu0 %v1237_v49 }
 0x124   :  { %1095 = vmatpush3.bf16.msra.mxu0 %v1238_v50 }
 0x125   :  { %1096 = vmatprep.subr.bf16.mxu0 %v1239_v51 }
 0x128   :  { %1097 = vmatpush3.bf16.msra.mxu0 %v1240_v52 }
 0x129   :  { %1098 = vmatprep.subr.bf16.mxu0 %v1241_v53 }
 0x12c   :  { %1099 = vmatpush3.bf16.msra.mxu0 %v1242_v54 }
 0x12d   :  { %1100 = vmatprep.subr.bf16.mxu0 %v1243_v55 }
 0x130   :  { %1101 = vmatpush3.bf16.msra.mxu0 %v1244_v56 }
 0x1d3   :  { %v717_v58 = vpop.f32.mrf.mxu0 }
 0x1d4   :  { %v718_v0 = vadd.f32 %v717_v58, %v342_v60 }
 0x1d5   :  { %v719_v59 = vpop.f32.mrf.mxu0 }
 0x1d6   :  { %v720_v2 = vadd.f32 %v719_v59, %v346_v62 }
 0x1d7   :  { %v721_v61 = vpop.f32.mrf.mxu0 }
 0x1d9   :  { %v722_v63 = vpop.f32.mrf.mxu0 }
 0x1db   :  { %v758_v1 = vpop.f32.mrf.mxu1 }
 0x1dc   :  { %v759_v3 = vadd.f32 %v758_v1, %v718_v0 }
 0x1dd   :  { %v760_v4 = vpop.f32.mrf.mxu1 }
 0x1de   :  { %v761_v5 = vadd.f32 %v760_v4, %v720_v2  ;;  %v765_v6 = vmax.f32 %v759_v3, 0.0 }
 0x1df   :  { %v762_v7 = vpop.f32.mrf.mxu1 }
 0x1e0   :  { %v766_v8 = vmax.f32 %v761_v5, 0.0  ;;  %v1084_v11 = vpack.c.bf16 %v765_v6, %v765_v6 }
 0x1e1   :  { %v763_v9 = vpop.f32.mrf.mxu1 }
 0x1e2   :  { %v1085_v10 = vpack.c.bf16 %v766_v8, %v766_v8 }
 0x1e4   :  { %951 = vmatprep.mubr.bf16.mxu0 %v1085_v10 }
 0x1e5   :  { %952 = vmatmul.mubr.bf16.vlgmr.msra.gmra.mxu0 %v1084_v11 }
 0x2a5   :  { %v1102_v13 = vpop.f32.mrf.mxu0 }
 0x2a7   :  { %v1103_v14 = vpop.f32.mrf.mxu0 }
 0x2a8   :  { %v1104_v15 = vadd.f32 %v1103_v14, %v1102_v13 }
 0x2a9   :  { %v1105_v16 = vpop.f32.mrf.mxu0 }
 0x2aa   :  { %v954_v17 = vadd.f32 %v1104_v15, %v1058_v12 }
 0x2ab   :  { %v1106_v18 = vpop.f32.mrf.mxu0 }
 0x2ac   :  { %959 = vst [vmem:[#allocation13] sm:$0xff] %v954_v17 }
 0x2ad   :  { %1356 = shalt.err (!%p1353_p1)
}
 0x2ae   :  { %969 = dma.vmem_to_hbm [thread:$0]  %s967_s8, 128, %s1473_s7, [#allocation6]  }
 0x2af   :  { %1371 = dma.done.wait [#allocation6], 128  }
 0x2b0   :  { %1372 = vsyncadd [#allocation6], 4294967168 }
 0x2b1   :  { %973 = vsyncpa [#allocation5], 1 }
 0x2b2   :  { %974 = vsyncpa [#allocation8], 1 }
 0x2b3   :  { %975 = vsyncpa [#allocation11], 1 }
 0x2b4   :  { %976 = vsyncpa [#allocation6], 1 }

</bundles_post_ra>
